<compile_context>
chip_gen: v7x
topology: tpu7x:2x2x1
jax: 0.10.0
libtpu: 0.0.40
codegen_flags: <defaults>
</compile_context>

<pallas_src>
import functools

import numpy as np
import jax
import jax.numpy as jnp
from jax.experimental import pallas as pl
from jax.experimental.pallas import tpu as pltpu

CHAR_VOCAB = 40               # size of the character dictionary (V)
D = 16                        # char embedding dim   (config['embedder']['dim'])
KERNELS = (2, 3)              # conv kernel widths   (config['encoder']['kernels'])
C = 32                        # out-channels per kernel size (config['encoder']['dim'])
DIM_OUT = C * len(KERNELS)    # self.dim_output (= 64)
MIN_WORD_LEN = max(KERNELS)   # self.min_word_length
OUT_PAD = 128                 # lane-dense output width; wrapper slices back to DIM_OUT
NEG = -1e30                   # poison value for non-existent (kernel, time-step) slots


def _round_up(x, m):
    return (x + m - 1) // m * m


def build_fused_matrix(emb_table, w_all, b_all, L, *, kernels=KERNELS,
                       mxu_dtype=jnp.bfloat16):
    """Fold embedding lookup + all conv taps + bias into a single MXU operand.

    Returns M of shape (LV_PAD, T_PAD):
      M[p*V + v, col(ki, t, c)] = sum_d E[v, d] * w[ki, t.. , d, c]   (im2col blocks)
      M[L*V,     col(ki, t, c)] = b[ki, c]   for valid t, NEG otherwise (bias row)
    Column layout packs `tpg = 128 // (K*C)` conv time-steps per 128-lane group so the
    in-kernel max-over-time works on full 128-lane slices.
    Built with numpy on host -> one device upload, no tiny device dispatches.
    """
    E = np.asarray(emb_table, np.float32)
    W = np.asarray(w_all, np.float32)
    Bv = np.asarray(b_all, np.float32)
    V, Dd = E.shape
    K, k_max, Dd2, Cc = W.shape
    assert Dd == Dd2 and K == len(kernels)
    slot = K * Cc                         # lanes per conv time-step (one C block / kernel)
    assert 128 % slot == 0
    tpg = 128 // slot                     # time-steps packed per 128-lane group
    assert tpg & (tpg - 1) == 0           # rotate-reduce in the kernel needs power of two
    t_max = L - min(kernels) + 1
    n_grp = -(-t_max // tpg)
    t_pad = n_grp * 128
    bias_lane = L * V                     # constant-1 one-hot lane -> bias folded in matmul
    lv_pad = _round_up(bias_lane + 1, 128)

    M = np.zeros((lv_pad, t_pad), np.float32)
    # Poison every slot through the bias row; valid (ki, t) slots overwrite it below, so
    # padded / non-existent time-steps can never win the max-over-time.
    M[bias_lane, :] = NEG
    for ki, k in enumerate(kernels):
        for t in range(L - k + 1):
            col0 = (t // tpg) * 128 + (t % tpg) * slot + ki * Cc
            M[bias_lane, col0:col0 + Cc] = Bv[ki, 0]
            for j in range(k):
                p = t + j                 # word position read by this conv tap
                M[p * V:(p + 1) * V, col0:col0 + Cc] = E @ W[ki, j]
    return jnp.asarray(M, dtype=mxu_dtype)


def _char_cnn_kernel(chars_ref, m_ref, o_ref, *, V, L, slot, bias_lane, n_grp):
    """One-hot(char ids) @ fused(embed (x) conv (+) bias), max-over-time, relu."""
    tn = chars_ref.shape[0]
    lv_pad = m_ref.shape[0]

    # one-hot over lanes: word position p, char v  ->  lane p*V + v ; bias lane always 1
    pos = jax.lax.broadcasted_iota(jnp.int32, (tn, L), 1) * V
    offs = chars_ref[...] + pos                                    # (tn, L) int32
    lane = jax.lax.broadcasted_iota(jnp.int32, (tn, lv_pad), 1)    # (tn, LV_PAD)
    oh = lane == bias_lane
    for p in range(L):                                             # small static loop (L=8)
        oh = jnp.logical_or(oh, lane == offs[:, p:p + 1])
    oh = oh.astype(m_ref.dtype)                                    # exact 0/1 in bf16

    # single MXU matmul: embedding gather + im2col conv + bias, f32 accumulation
    y = jnp.dot(oh, m_ref[...], preferred_element_type=jnp.float32)  # (tn, n_grp*128)

    # max over conv time steps: across 128-lane groups, then across sub-slots via roll
    m = y[:, 0:128]
    for g in range(1, n_grp):
        m = jnp.maximum(m, y[:, g * 128:(g + 1) * 128])
    shift = slot
    while shift < 128:                                             # slot=64 -> one rotate
        m = jnp.maximum(m, pltpu.roll(m, shift=shift, axis=1))
        shift *= 2

    # relu; lanes 0:DIM_OUT hold [kernel0 | kernel1], upper lanes are duplicates
    o_ref[...] = jnp.maximum(m, 0.0).astype(o_ref.dtype)


def char_cnn_forward(chars2d, fused_m, *, tile_n=512):
    """chars2d: (N, L) int32, fused_m: (LV_PAD, T_PAD) -> (N_pad, OUT_PAD) f32."""
    N, L = chars2d.shape
    lv_pad, t_pad = fused_m.shape
    slot = len(KERNELS) * C
    n_grp = t_pad // 128
    bias_lane = L * CHAR_VOCAB

    # ragged N: pad rows up to a multiple of the tile (padded rows use char id 0,
    # sliced off by the wrapper)
    tile = min(tile_n, _round_up(N, 8))
    n_pad = _round_up(N, tile)
    if n_pad != N:
        chars2d = jnp.pad(chars2d, ((0, n_pad - N), (0, 0)))

    kernel = functools.partial(_char_cnn_kernel, V=CHAR_VOCAB, L=L, slot=slot,
                               bias_lane=bias_lane, n_grp=n_grp)
    cost = pl.CostEstimate(
        flops=2 * n_pad * lv_pad * t_pad,
        transcendentals=0,
        bytes_accessed=n_pad * (L * 4 + OUT_PAD * 4) + lv_pad * t_pad * 2,
    )
    return pl.pallas_call(
        kernel,
        out_shape=jax.ShapeDtypeStruct((n_pad, OUT_PAD), jnp.float32),
        grid_spec=pltpu.PrefetchScalarGridSpec(
            num_scalar_prefetch=0,
            grid=(n_pad // tile,),
            in_specs=[
                pl.BlockSpec((tile, L), lambda i: (i, 0)),          # raw char indices
                pl.BlockSpec((lv_pad, t_pad), lambda i: (0, 0)),    # fused weights (resident)
            ],
            out_specs=pl.BlockSpec((tile, OUT_PAD), lambda i: (i, 0)),
        ),
        compiler_params=pltpu.CompilerParams(dimension_semantics=("parallel",)),
        cost_estimate=cost,
    )(chars2d, fused_m)


def text_field_embedder_characters(characters, emb_table, w_all, b_all, *,
                                   tile_n=512, mxu_dtype=jnp.bfloat16):
    """Full forward. characters: (B, W, L) int32 -> (B, W, DIM_OUT) f32."""
    B, W, L = characters.shape
    assert L >= MIN_WORD_LEN
    # TODO(synk): training-mode dropout not implemented (inference semantics: identity).
    fused_m = build_fused_matrix(emb_table, w_all, b_all, L, mxu_dtype=mxu_dtype)
    chars2d = characters.reshape(B * W, L).astype(jnp.int32)
    out = char_cnn_forward(chars2d, fused_m, tile_n=tile_n)        # (N_pad, 128)
    return out[:B * W, :DIM_OUT].reshape(B, W, DIM_OUT)


if __name__ == "__main__":
    key = jax.random.PRNGKey(0)
    k_emb, k_w, k_b, k_idx = jax.random.split(key, 4)

    B, Wn, L = 2, 8, 8                      # batch, words per sample, chars per word
    assert L >= MIN_WORD_LEN

    # deterministic parameter init (synthetic, no checkpoint load)
    emb_table = 0.1 * jax.random.normal(k_emb, (CHAR_VOCAB, D), jnp.float32)
    k_max = max(KERNELS)
    w_all = jnp.zeros((len(KERNELS), k_max, D, C), jnp.float32)
    for ki, ksz in enumerate(KERNELS):
        wk = jax.random.normal(jax.random.fold_in(k_w, ki), (ksz, D, C), jnp.float32)
        w_all = w_all.at[ki, :ksz].set(wk / jnp.sqrt(jnp.float32(ksz * D)))
    b_all = 0.01 * jax.random.normal(k_b, (len(KERNELS), 1, C), jnp.float32)

    # pure-JAX f32 reference (mirrors the PyTorch module)
    def ref_forward(chars, Bb, Ww):
        x = jnp.take(emb_table, chars, axis=0).reshape(Bb * Ww, L, D)
        feats = []
        for ki, ksz in enumerate(KERNELS):
            conv = jnp.stack(
                [sum(x[:, t + j, :] @ w_all[ki, j] for j in range(ksz)) + b_all[ki, 0]
                 for t in range(L - ksz + 1)], axis=1)
            feats.append(conv.max(axis=1))
        return jax.nn.relu(jnp.concatenate(feats, axis=-1)).reshape(Bb, Ww, DIM_OUT)

    # small run (grid = 1 tile)
    characters = jax.random.randint(k_idx, (B, Wn, L), 0, CHAR_VOCAB, dtype=jnp.int32)
    out = text_field_embedder_characters(characters, emb_table, w_all, b_all)
    jax.block_until_ready(out)
    ref = ref_forward(characters, B, Wn)
    assert out.shape == (B, Wn, DIM_OUT)
    assert jnp.allclose(out, ref, atol=1e-2, rtol=1e-2), float(jnp.max(jnp.abs(out - ref)))

    # larger ragged run: exercises 512-row tiles, row padding, multi-step parallel grid
    B2, W2 = 3, 700                          # N = 2100 -> padded to 2560, grid = 5
    chars2 = jax.random.randint(jax.random.fold_in(k_idx, 1), (B2, W2, L),
                                0, CHAR_VOCAB, dtype=jnp.int32)
    out2 = text_field_embedder_characters(chars2, emb_table, w_all, b_all)
    jax.block_until_ready(out2)
    ref2 = ref_forward(chars2, B2, W2)
    assert jnp.allclose(out2, ref2, atol=1e-2, rtol=1e-2), \
        float(jnp.max(jnp.abs(out2 - ref2)))

    print("KERNEL_OK")
</pallas_src>

<mosaic_0001>
module attributes {stable_mosaic.version = 11 : i64} {
  func.func @_char_cnn_kernel(%arg0: i32, %arg1: memref<16x8xi32, #tpu.memory_space<vmem>>, %arg2: memref<384x512xbf16, #tpu.memory_space<vmem>>, %arg3: memref<16x128xf32, #tpu.memory_space<vmem>>) attributes {dimension_semantics = [#tpu.dimension_semantics<parallel>], iteration_bounds = array<i64: 1>, scalar_prefetch = 0 : i64, scratch_operands = 0 : i64, tpu.core_type = #tpu.core_type<tc>, window_params = [{transform_indices = @transform_0, window_bounds = array<i64: 16, 8>}, {pipeline_mode = #tpu.pipeline_mode<synchronous>, transform_indices = @transform_1, window_bounds = array<i64: 384, 512>}, {transform_indices = @transform_2, window_bounds = array<i64: 16, 128>}]} {
    %0 = tpu.iota {dimensions = array<i32: 1>} : vector<16x8xi32>
    %c40_i32 = arith.constant 40 : i32
    %1 = vector.broadcast %c40_i32 : i32 to vector<16x8xi32>
    %2 = arith.muli %0, %1 : vector<16x8xi32>
    %c0 = arith.constant 0 : index
    %c0_0 = arith.constant 0 : index
    %3 = vector.load %arg1[%c0, %c0_0] : memref<16x8xi32, #tpu.memory_space<vmem>>, vector<16x8xi32>
    %4 = arith.addi %3, %2 : vector<16x8xi32>
    %5 = tpu.iota {dimensions = array<i32: 1>} : vector<16x384xi32>
    %c320_i32 = arith.constant 320 : i32
    %6 = vector.broadcast %c320_i32 : i32 to vector<16x384xi32>
    %7 = arith.cmpi eq, %5, %6 : vector<16x384xi32>
    %8 = vector.extract_strided_slice %4 {offsets = [0, 0], sizes = [16, 1], strides = [1, 1]} : vector<16x8xi32> to vector<16x1xi32>
    %9 = vector.broadcast %8 : vector<16x1xi32> to vector<16x384xi32>
    %10 = arith.cmpi eq, %5, %9 : vector<16x384xi32>
    %11 = arith.ori %7, %10 : vector<16x384xi1>
    %12 = vector.extract_strided_slice %4 {offsets = [0, 1], sizes = [16, 1], strides = [1, 1]} : vector<16x8xi32> to vector<16x1xi32>
    %13 = vector.broadcast %12 : vector<16x1xi32> to vector<16x384xi32>
    %14 = arith.cmpi eq, %5, %13 : vector<16x384xi32>
    %15 = arith.ori %11, %14 : vector<16x384xi1>
    %16 = vector.extract_strided_slice %4 {offsets = [0, 2], sizes = [16, 1], strides = [1, 1]} : vector<16x8xi32> to vector<16x1xi32>
    %17 = vector.broadcast %16 : vector<16x1xi32> to vector<16x384xi32>
    %18 = arith.cmpi eq, %5, %17 : vector<16x384xi32>
    %19 = arith.ori %15, %18 : vector<16x384xi1>
    %20 = vector.extract_strided_slice %4 {offsets = [0, 3], sizes = [16, 1], strides = [1, 1]} : vector<16x8xi32> to vector<16x1xi32>
    %21 = vector.broadcast %20 : vector<16x1xi32> to vector<16x384xi32>
    %22 = arith.cmpi eq, %5, %21 : vector<16x384xi32>
    %23 = arith.ori %19, %22 : vector<16x384xi1>
    %24 = vector.extract_strided_slice %4 {offsets = [0, 4], sizes = [16, 1], strides = [1, 1]} : vector<16x8xi32> to vector<16x1xi32>
    %25 = vector.broadcast %24 : vector<16x1xi32> to vector<16x384xi32>
    %26 = arith.cmpi eq, %5, %25 : vector<16x384xi32>
    %27 = arith.ori %23, %26 : vector<16x384xi1>
    %28 = vector.extract_strided_slice %4 {offsets = [0, 5], sizes = [16, 1], strides = [1, 1]} : vector<16x8xi32> to vector<16x1xi32>
    %29 = vector.broadcast %28 : vector<16x1xi32> to vector<16x384xi32>
    %30 = arith.cmpi eq, %5, %29 : vector<16x384xi32>
    %31 = arith.ori %27, %30 : vector<16x384xi1>
    %32 = vector.extract_strided_slice %4 {offsets = [0, 6], sizes = [16, 1], strides = [1, 1]} : vector<16x8xi32> to vector<16x1xi32>
    %33 = vector.broadcast %32 : vector<16x1xi32> to vector<16x384xi32>
    %34 = arith.cmpi eq, %5, %33 : vector<16x384xi32>
    %35 = arith.ori %31, %34 : vector<16x384xi1>
    %36 = vector.extract_strided_slice %4 {offsets = [0, 7], sizes = [16, 1], strides = [1, 1]} : vector<16x8xi32> to vector<16x1xi32>
    %37 = vector.broadcast %36 : vector<16x1xi32> to vector<16x384xi32>
    %38 = arith.cmpi eq, %5, %37 : vector<16x384xi32>
    %39 = arith.ori %35, %38 : vector<16x384xi1>
    %40 = arith.extui %39 : vector<16x384xi1> to vector<16x384xi32>
    %41 = arith.sitofp %40 : vector<16x384xi32> to vector<16x384xf32>
    %42 = arith.truncf %41 : vector<16x384xf32> to vector<16x384xbf16>
    %c0_1 = arith.constant 0 : index
    %c0_2 = arith.constant 0 : index
    %43 = vector.load %arg2[%c0_1, %c0_2] : memref<384x512xbf16, #tpu.memory_space<vmem>>, vector<384x512xbf16>
    %cst = arith.constant dense<0.000000e+00> : vector<16x512xf32>
    %44 = tpu.matmul %42, %43, %cst {dimension_numbers = #tpu.dot_dimension_numbers<[1], [0], [0], [1], [0, 0, 1, 1], [], []>} : vector<16x384xbf16>, vector<384x512xbf16>, vector<16x512xf32> -> vector<16x512xf32>
    %45 = vector.extract_strided_slice %44 {offsets = [0, 0], sizes = [16, 128], strides = [1, 1]} : vector<16x512xf32> to vector<16x128xf32>
    %46 = vector.extract_strided_slice %44 {offsets = [0, 128], sizes = [16, 128], strides = [1, 1]} : vector<16x512xf32> to vector<16x128xf32>
    %47 = arith.maximumf %45, %46 : vector<16x128xf32>
    %48 = vector.extract_strided_slice %44 {offsets = [0, 256], sizes = [16, 128], strides = [1, 1]} : vector<16x512xf32> to vector<16x128xf32>
    %49 = arith.maximumf %47, %48 : vector<16x128xf32>
    %50 = vector.extract_strided_slice %44 {offsets = [0, 384], sizes = [16, 128], strides = [1, 1]} : vector<16x512xf32> to vector<16x128xf32>
    %51 = arith.maximumf %49, %50 : vector<16x128xf32>
    %c64_i32 = arith.constant 64 : i32
    %52 = tpu.dynamic_rotate %51 by %c64_i32 dim 1 : vector<16x128xf32>, i32 -> vector<16x128xf32>
    %53 = arith.maximumf %51, %52 : vector<16x128xf32>
    %cst_3 = arith.constant 0.000000e+00 : f32
    %54 = vector.broadcast %cst_3 : f32 to vector<16x128xf32>
    %55 = arith.maximumf %53, %54 : vector<16x128xf32>
    %c0_4 = arith.constant 0 : index
    %c0_5 = arith.constant 0 : index
    %56 = vector.load %arg3[%c0_4, %c0_5] : memref<16x128xf32, #tpu.memory_space<vmem>>, vector<16x128xf32>
    tpu.vector_store %arg3[%c0_4, %c0_5], %55 {strides = array<i32>} : memref<16x128xf32, #tpu.memory_space<vmem>>, vector<16x128xf32>,
    return
  }
  func.func @transform_0(%arg0: i32) -> (i32, i32) {
    %c0_i32 = arith.constant 0 : i32
    %c0_i32_0 = arith.constant 0 : i32
    return %arg0, %c0_i32 : i32, i32
  }
  func.func @transform_1(%arg0: i32) -> (i32, i32) {
    %c0_i32 = arith.constant 0 : i32
    %c0_i32_0 = arith.constant 0 : i32
    %c0_i32_1 = arith.constant 0 : i32
    return %c0_i32, %c0_i32_0 : i32, i32
  }
  func.func @transform_2(%arg0: i32) -> (i32, i32) {
    %c0_i32 = arith.constant 0 : i32
    %c0_i32_0 = arith.constant 0 : i32
    return %arg0, %c0_i32 : i32, i32
  }
}

</mosaic_0001>

<bundles_post_ra>
// kernel: tpu_custom_call.1
= control target key start
LH: loop header
LB: loop body
LE: loop exit
PB: predicated region body
PF: predicated region fallthrough
CT: control target
= control target key end

     0   :  { %7 = vsyncpa [#allocation3], 0  ;;  %s1574_s0 = inlined_call_operand.vmem [shape: s32[16,8], index: 0, kind: input, shape index: {}]   ;;  %s1575_s1 = inlined_call_operand.hbm [shape: bf16[384,512], index: 1, kind: input, shape index: {}]   ;;  %s1576_s2 = inlined_call_operand.hbm [shape: f32[16,128], index: 2, kind: output, shape index: {}]  }
   0x1   :  { %8 = vsyncpa [#allocation4], 0  ;;  %s1310_s9 = smov [#allocation2]   ;;  %s1262_s13 = scalar_lea.hbm %s1575_s1, 12288 }
   0x2   :  { %s16_s10 = sshll.u32 %s1310_s9, 4  ;;  %p1263_p0 = scmp.ne.s32.totalorder %s1575_s1, %s1262_s13  ;;  %s17_s10 = int_to_ptr.vmem [resolvable:$true] %s16_s10 }
   0x3   :  { %p1266_p1 = scmp.lt.u32.totalorder %s1262_s13, %s1575_s1 }
   0x5   :  { %p1268_p2 = pnand %p1266_p1, %p1263_p0 }
   0x7   :  { %1271 = shalt.err (!%p1268_p2)
}
   0x8   :  { %s1272_s18 = scalar_lea.vmem %s17_s10, 12288  ;;  %p1277_p4 = scmp.lt.s32.totalorder %s17_s10, %s17_s10 }
   0x9   :  { %p1273_p3 = scmp.ne.s32.totalorder %s17_s10, %s1272_s18  ;;  %p1278_p5 = scmp.lt.s32.totalorder %s1272_s18, %s1272_s18 }
   0xb   :  { %p1279_p6 = por %p1278_p5, %p1277_p4 }
   0xd   :  { %p1280_p7 = pnand %p1279_p6, %p1273_p3 }
   0xf   :  { %1283 = shalt.err (!%p1280_p7)
}
  0x10   :  { %s1311_s19 = smov 256   ;;  %s1312_s20 = smov 16  }
  0x11   :  { %22 = dma.hbm_to_vmem [thread:$0]  %s1575_s1, 12288, %s17_s10, [#allocation3], %s1311_s19, %s1311_s19, %s1312_s20  }
  0x12   :  { %1306 = dma.done.wait [#allocation3], 12288  }
  0x13   :  { %1307 = vsyncadd [#allocation3], 4294955008  ;;  %v27_v0 = vlaneseq  ;;  %v1313_v1 = vmov 1   ;;  %v1314_v2 = vmov 0   ;;  %v30_v5 = vld [vmem:[%s1574_s0] sm:$0xff]  ;;  %v31_v6 = vld [vmem:[%s1574_s0 + $0x8] sm:$0xff] }
  0x14   :  { %1106 = vset.pattern.permute.xlu1 %v1313_v1  ;;  %1105 = vset.pattern.permute.xlu0 %v1314_v2  ;;  %v1118_v8 = vld [vmem:[#allocation2 + $0x4] ss:$16 sps:$4 sm:$0xff]   ;;  %v1120_v9 = vld [vmem:[#allocation2 + $0xc] ss:$16 sps:$4 sm:$0xff]   ;;  %v1122_v10 = vld [vmem:[#allocation2] ss:$16 sps:$4 sm:$0xff]  }
  0x15   :  { %v1354_v3 = vand.u32 127, %v27_v0  ;;  %v1123_v12 = vld [vmem:[#allocation2 + $0x8] ss:$16 sps:$4 sm:$0xff]   ;;  %774 = vmatprep.subr.bf16.mxu0 %v1118_v8  ;;  %860 = vmatprep.subr.bf16.mxu1 %v1120_v9  ;;  %v1124_v13 = vld [vmem:[#allocation2 + $0x24] ss:$16 sps:$4 sm:$0xff]   ;;  %v1315_v23 = vmov 2  }
  0x16   :  { %775 = vmatpush1.bf16.msra.mxu0 %v1122_v10  ;;  %861 = vmatpush1.bf16.msra.mxu1 %v1123_v12  ;;  %v1126_v14 = vld [vmem:[#allocation2 + $0x2c] ss:$16 sps:$4 sm:$0xff]   ;;  %v1128_v15 = vld [vmem:[#allocation2 + $0x20] ss:$16 sps:$4 sm:$0xff]   ;;  %v1129_v16 = vld [vmem:[#allocation2 + $0x28] ss:$16 sps:$4 sm:$0xff]  }
  0x17   :  { %v29_v4 = vmul.u32 40, %v1354_v3  ;;  %776 = vmatprep.subr.bf16.mxu0 %v1124_v13  ;;  %v1130_v17 = vld [vmem:[#allocation2 + $0x44] ss:$16 sps:$4 sm:$0xff]   ;;  %v1132_v18 = vld [vmem:[#allocation2 + $0x4c] ss:$16 sps:$4 sm:$0xff]   ;;  %862 = vmatprep.subr.bf16.mxu1 %v1126_v14  ;;  %v1316_v28 = vmov 3  }
  0x18   :  { %v1134_v19 = vld [vmem:[#allocation2 + $0x40] ss:$16 sps:$4 sm:$0xff]   ;;  %v1135_v20 = vld [vmem:[#allocation2 + $0x48] ss:$16 sps:$4 sm:$0xff]   ;;  %v1136_v21 = vld [vmem:[#allocation2 + $0x64] ss:$16 sps:$4 sm:$0xff]  }
  0x19   :  { %v1363_v7 = vadd.s32 %v30_v5, %v29_v4  ;;  %v1367_v11 = vadd.s32 %v31_v6, %v29_v4  ;;  %v1138_v22 = vld [vmem:[#allocation2 + $0x6c] ss:$16 sps:$4 sm:$0xff]   ;;  %v1140_v24 = vld [vmem:[#allocation2 + $0x60] ss:$16 sps:$4 sm:$0xff]   ;;  %v1141_v25 = vld [vmem:[#allocation2 + $0x68] ss:$16 sps:$4 sm:$0xff]  }
  0x1a   :  { %777 = vmatpush1.bf16.msra.mxu0 %v1128_v15  ;;  %863 = vmatpush1.bf16.msra.mxu1 %v1129_v16  ;;  %v1142_v26 = vld [vmem:[#allocation2 + $0x84] ss:$16 sps:$4 sm:$0xff]   ;;  %v1144_v27 = vld [vmem:[#allocation2 + $0x8c] ss:$16 sps:$4 sm:$0xff]   ;;  %v1146_v29 = vld [vmem:[#allocation2 + $0x80] ss:$16 sps:$4 sm:$0xff]  }
  0x1b   :  { %58 = vperm.xlu1 %1106, %v1363_v7   ;;  %40 = vperm.xlu0 %1105, %v1363_v7   ;;  %v1147_v30 = vld [vmem:[#allocation2 + $0x88] ss:$16 sps:$4 sm:$0xff]   ;;  %v1148_v31 = vld [vmem:[#allocation2 + $0xa4] ss:$16 sps:$4 sm:$0xff]   ;;  %v1150_v32 = vld [vmem:[#allocation2 + $0xac] ss:$16 sps:$4 sm:$0xff]  }
  0x1c   :  { %778 = vmatprep.subr.bf16.mxu0 %v1130_v17  ;;  %864 = vmatprep.subr.bf16.mxu1 %v1132_v18  ;;  %v1317_v33 = vmov 4   ;;  %v1318_v34 = vmov 5   ;;  %v1152_v35 = vld [vmem:[#allocation2 + $0xa0] ss:$16 sps:$4 sm:$0xff]   ;;  %v1153_v36 = vld [vmem:[#allocation2 + $0xa8] ss:$16 sps:$4 sm:$0xff]  }
  0x1d   :  { %v1154_v37 = vld [vmem:[#allocation2 + $0xc4] ss:$16 sps:$4 sm:$0xff]   ;;  %v1156_v38 = vld [vmem:[#allocation2 + $0xcc] ss:$16 sps:$4 sm:$0xff]   ;;  %v1319_v39 = vmov 6   ;;  %v1320_v49 = vmov 7  }
  0x1e   :  { %779 = vmatpush1.bf16.msra.mxu0 %v1134_v19  ;;  %865 = vmatpush1.bf16.msra.mxu1 %v1135_v20  ;;  %v1158_v40 = vld [vmem:[#allocation2 + $0xc0] ss:$16 sps:$4 sm:$0xff]   ;;  %v1159_v41 = vld [vmem:[#allocation2 + $0xc8] ss:$16 sps:$4 sm:$0xff]   ;;  %v1160_v42 = vld [vmem:[#allocation2 + $0xe4] ss:$16 sps:$4 sm:$0xff]  }
  0x1f   :  { %61 = vperm.xlu1 %1106, %v1367_v11   ;;  %43 = vperm.xlu0 %1105, %v1367_v11   ;;  %v1162_v43 = vld [vmem:[#allocation2 + $0xec] ss:$16 sps:$4 sm:$0xff]   ;;  %v1164_v44 = vld [vmem:[#allocation2 + $0xe0] ss:$16 sps:$4 sm:$0xff]   ;;  %v1165_v45 = vld [vmem:[#allocation2 + $0xe8] ss:$16 sps:$4 sm:$0xff]  }
  0x20   :  { %780 = vmatprep.subr.bf16.mxu0 %v1136_v21  ;;  %866 = vmatprep.subr.bf16.mxu1 %v1138_v22  ;;  %v1166_v46 = vld [vmem:[#allocation2 + $0x104] ss:$16 sps:$4 sm:$0xff]   ;;  %v1168_v47 = vld [vmem:[#allocation2 + $0x10c] ss:$16 sps:$4 sm:$0xff]   ;;  %v1170_v48 = vld [vmem:[#allocation2 + $0x100] ss:$16 sps:$4 sm:$0xff]  }
  0x21   :  { %v1171_v50 = vld [vmem:[#allocation2 + $0x108] ss:$16 sps:$4 sm:$0xff]   ;;  %v1172_v51 = vld [vmem:[#allocation2 + $0x124] ss:$16 sps:$4 sm:$0xff]   ;;  %v1174_v52 = vld [vmem:[#allocation2 + $0x12c] ss:$16 sps:$4 sm:$0xff]  }
  0x22   :  { %781 = vmatpush1.bf16.msra.mxu0 %v1140_v24  ;;  %867 = vmatpush1.bf16.msra.mxu1 %v1141_v25  ;;  %v1176_v53 = vld [vmem:[#allocation2 + $0x120] ss:$16 sps:$4 sm:$0xff]   ;;  %v1177_v54 = vld [vmem:[#allocation2 + $0x128] ss:$16 sps:$4 sm:$0xff]   ;;  %v1178_v55 = vld [vmem:[#allocation2 + $0x144] ss:$16 sps:$4 sm:$0xff]  }
  0x23   :  { %1108 = vset.pattern.permute.xlu1 %v1315_v23  ;;  %1107 = vset.pattern.permute.xlu0 %v1315_v23  ;;  %v1180_v56 = vld [vmem:[#allocation2 + $0x14c] ss:$16 sps:$4 sm:$0xff]   ;;  %v1182_v57 = vld [vmem:[#allocation2 + $0x140] ss:$16 sps:$4 sm:$0xff]   ;;  %v1183_v58 = vld [vmem:[#allocation2 + $0x148] ss:$16 sps:$4 sm:$0xff]  }
  0x24   :  { %79 = vperm.xlu1 %1108, %v1367_v11   ;;  %76 = vperm.xlu0 %1107, %v1363_v7   ;;  %v1184_v59 = vld [vmem:[#allocation2 + $0x164] ss:$16 sps:$4 sm:$0xff]   ;;  %v1186_v60 = vld [vmem:[#allocation2 + $0x16c] ss:$16 sps:$4 sm:$0xff]   ;;  %v1188_v61 = vld [vmem:[#allocation2 + $0x160] ss:$16 sps:$4 sm:$0xff]  }
  0x25   :  { %782 = vmatprep.subr.bf16.mxu0 %v1142_v26  ;;  %868 = vmatprep.subr.bf16.mxu1 %v1144_v27  ;;  %v1189_v62 = vld [vmem:[#allocation2 + $0x168] ss:$16 sps:$4 sm:$0xff]   ;;  %v1190_v63 = vld [vmem:[#allocation2 + $0x184] ss:$16 sps:$4 sm:$0xff]   ;;  %v1192_v0 = vld [vmem:[#allocation2 + $0x18c] ss:$16 sps:$4 sm:$0xff]  }
  0x26   :  { %783 = vmatpush1.bf16.msra.mxu0 %v1146_v29  ;;  %869 = vmatpush1.bf16.msra.mxu1 %v1147_v30  ;;  %v1194_v1 = vld [vmem:[#allocation2 + $0x180] ss:$16 sps:$4 sm:$0xff]   ;;  %v1195_v4 = vld [vmem:[#allocation2 + $0x188] ss:$16 sps:$4 sm:$0xff]   ;;  %v1196_v5 = vld [vmem:[#allocation2 + $0x1a4] ss:$16 sps:$4 sm:$0xff]  }
  0x27   :  { %784 = vmatprep.subr.bf16.mxu0 %v1148_v31  ;;  %870 = vmatprep.subr.bf16.mxu1 %v1150_v32  ;;  %v1198_v6 = vld [vmem:[#allocation2 + $0x1ac] ss:$16 sps:$4 sm:$0xff]   ;;  %v1201_v8 = vld [vmem:[#allocation2 + $0x1a8] ss:$16 sps:$4 sm:$0xff]   ;;  %v1202_v9 = vld [vmem:[#allocation2 + $0x1c4] ss:$16 sps:$4 sm:$0xff]  }
  0x28   :  { %1109 = vset.pattern.permute.xlu1 %v1316_v28  ;;  %1110 = vset.pattern.permute.xlu0 %v1316_v28  ;;  %v1204_v10 = vld [vmem:[#allocation2 + $0x1cc] ss:$16 sps:$4 sm:$0xff]   ;;  %v1207_v12 = vld [vmem:[#allocation2 + $0x1c8] ss:$16 sps:$4 sm:$0xff]   ;;  %v1208_v13 = vld [vmem:[#allocation2 + $0x1e4] ss:$16 sps:$4 sm:$0xff]  }
  0x29   :  { %94 = vperm.xlu1 %1109, %v1363_v7   ;;  %97 = vperm.xlu0 %1110, %v1367_v11   ;;  %v1210_v14 = vld [vmem:[#allocation2 + $0x1ec] ss:$16 sps:$4 sm:$0xff]   ;;  %v1212_v15 = vld [vmem:[#allocation2 + $0x1e0] ss:$16 sps:$4 sm:$0xff]   ;;  %v1213_v16 = vld [vmem:[#allocation2 + $0x1e8] ss:$16 sps:$4 sm:$0xff]  }
  0x2a   :  { %785 = vmatpush1.bf16.msra.mxu0 %v1152_v35  ;;  %871 = vmatpush1.bf16.msra.mxu1 %v1153_v36  ;;  %v1216_v17 = vld [vmem:[#allocation2 + $0x204] ss:$16 sps:$4 sm:$0xff]   ;;  %v1219_v18 = vld [vmem:[#allocation2 + $0x20c] ss:$16 sps:$4 sm:$0xff]   ;;  %v1394_v24 = vadd.s32 128, %v1354_v3  ;;  %s1322_s0 = smov 64  }
  0x2b   :  { %786 = vmatprep.subr.bf16.mxu0 %v1154_v37  ;;  %872 = vmatprep.subr.bf16.mxu1 %v1156_v38  ;;  %s1323_s1 = smov [#allocation5]  }
  0x2c   :  { %s967_s27 = sshll.u32 %s1323_s1, 4  ;;  %s968_s27 = int_to_ptr.vmem [resolvable:$true] %s967_s27 }
  0x2d   :  { %1111 = vset.pattern.permute.xlu1 %v1317_v33  ;;  %1112 = vset.pattern.permute.xlu0 %v1318_v34  ;;  %s1284_s28 = scalar_lea.vmem %s968_s27, 256  ;;  %p1289_p9 = scmp.lt.s32.totalorder %s968_s27, %s968_s27 }
  0x2e   :  { %112 = vperm.xlu1 %1111, %v1363_v7   ;;  %130 = vperm.xlu0 %1112, %v1363_v7   ;;  %p1285_p8 = scmp.ne.s32.totalorder %s968_s27, %s1284_s28  ;;  %p1290_p10 = scmp.lt.s32.totalorder %s1284_s28, %s1284_s28 }
  0x2f   :  { %787 = vmatpush1.bf16.msra.mxu0 %v1158_v40  ;;  %873 = vmatpush1.bf16.msra.mxu1 %v1159_v41 }
  0x30   :  { %788 = vmatprep.subr.bf16.mxu0 %v1160_v42  ;;  %874 = vmatprep.subr.bf16.mxu1 %v1162_v43  ;;  %v1321_v42 = vmov 0.0   ;;  %p1291_p11 = por %p1290_p10, %p1289_p9 }
  0x32   :  { %115 = vperm.xlu1 %1111, %v1367_v11   ;;  %1115 = vset.pattern.permute.xlu0 %v1319_v39  ;;  %p1292_p12 = pnand %p1291_p11, %p1285_p8 }
  0x33   :  { %151 = vperm.xlu0 %1115, %v1367_v11   ;;  %789 = vmatpush1.bf16.msra.mxu0 %v1164_v44 }
  0x34   :  { %875 = vmatpush1.bf16.msra.mxu1 %v1165_v45  ;;  %790 = vmatprep.subr.bf16.mxu0 %v1166_v46 }
  0x35   :  { %876 = vmatprep.subr.bf16.mxu1 %v1168_v47 }
  0x36   :  { %1113 = vset.pattern.permute.xlu1 %v1318_v34 }
  0x37   :  { %133 = vperm.xlu1 %1113, %v1367_v11   ;;  %1117 = vset.pattern.permute.xlu0 %v1320_v49 }
  0x38   :  { %791 = vmatpush1.bf16.msra.mxu0 %v1170_v48  ;;  %877 = vmatpush1.bf16.msra.mxu1 %v1171_v50  ;;  %v1217_v50 = vld [vmem:[#allocation2 + $0x208] ss:$16 sps:$4 sm:$0xff]  }
  0x39   :  { %792 = vmatprep.subr.bf16.mxu0 %v1172_v51  ;;  %878 = vmatprep.subr.bf16.mxu1 %v1174_v52  ;;  %v1222_v51 = vld [vmem:[#allocation2 + $0x224] ss:$16 sps:$4 sm:$0xff]   ;;  %v1225_v52 = vld [vmem:[#allocation2 + $0x22c] ss:$16 sps:$4 sm:$0xff]  }
  0x3b   :  { %1114 = vset.pattern.permute.xlu1 %v1319_v39 }
  0x3c   :  { %148 = vperm.xlu1 %1114, %v1363_v7   ;;  %793 = vmatpush1.bf16.msra.mxu0 %v1176_v53  ;;  %v1220_v53 = vld [vmem:[#allocation2 + $0x220] ss:$16 sps:$4 sm:$0xff]  }
  0x3d   :  { %879 = vmatpush1.bf16.msra.mxu1 %v1177_v54  ;;  %794 = vmatprep.subr.bf16.mxu0 %v1178_v55  ;;  %v1223_v54 = vld [vmem:[#allocation2 + $0x228] ss:$16 sps:$4 sm:$0xff]   ;;  %v1523_v55 = vadd.s32 256, %v1354_v3 }
  0x3e   :  { %880 = vmatprep.subr.bf16.mxu1 %v1180_v56  ;;  %v1228_v56 = vld [vmem:[#allocation2 + $0x244] ss:$16 sps:$4 sm:$0xff]  }
  0x40   :  { %1116 = vset.pattern.permute.xlu1 %v1320_v49  ;;  %795 = vmatpush1.bf16.msra.mxu0 %v1182_v57  ;;  %v1214_v49 = vld [vmem:[#allocation2 + $0x200] ss:$16 sps:$4 sm:$0xff]   ;;  %v1231_v57 = vld [vmem:[#allocation2 + $0x24c] ss:$16 sps:$4 sm:$0xff]  }
  0x41   :  { %166 = vperm.xlu1 %1116, %v1363_v7   ;;  %881 = vmatpush1.bf16.msra.mxu1 %v1183_v58  ;;  %v1200_v7 = vld [vmem:[#allocation2 + $0x1a0] ss:$16 sps:$4 sm:$0xff]  }
  0x42   :  { %796 = vmatprep.subr.bf16.mxu0 %v1184_v59  ;;  %882 = vmatprep.subr.bf16.mxu1 %v1186_v60  ;;  %v1226_v58 = vld [vmem:[#allocation2 + $0x240] ss:$16 sps:$4 sm:$0xff]   ;;  %v1229_v59 = vld [vmem:[#allocation2 + $0x248] ss:$16 sps:$4 sm:$0xff]   ;;  %v1237_v60 = vld [vmem:[#allocation2 + $0x26c] ss:$16 sps:$4 sm:$0xff]  }
  0x44   :  { %797 = vmatpush1.bf16.msra.mxu0 %v1188_v61  ;;  %v1235_v61 = vld [vmem:[#allocation2 + $0x268] ss:$16 sps:$4 sm:$0xff]  }
  0x45   :  { %169 = vperm.xlu1 %1116, %v1367_v11   ;;  %883 = vmatpush1.bf16.msra.mxu1 %v1189_v62  ;;  %v1206_v11 = vld [vmem:[#allocation2 + $0x1c0] ss:$16 sps:$4 sm:$0xff]   ;;  %v1240_v62 = vld [vmem:[#allocation2 + $0x284] ss:$16 sps:$4 sm:$0xff]  }
  0x46   :  { %798 = vmatprep.subr.bf16.mxu0 %v1190_v63  ;;  %884 = vmatprep.subr.bf16.mxu1 %v1192_v0  ;;  %v1243_v63 = vld [vmem:[#allocation2 + $0x28c] ss:$16 sps:$4 sm:$0xff]   ;;  %v1238_v0 = vld [vmem:[#allocation2 + $0x280] ss:$16 sps:$4 sm:$0xff]  }
  0x48   :  { %799 = vmatpush1.bf16.msra.mxu0 %v1194_v1  ;;  %v1241_v1 = vld [vmem:[#allocation2 + $0x288] ss:$16 sps:$4 sm:$0xff]  }
  0x49   :  { %885 = vmatpush1.bf16.msra.mxu1 %v1195_v4  ;;  %800 = vmatprep.subr.bf16.mxu0 %v1196_v5  ;;  %v1246_v4 = vld [vmem:[#allocation2 + $0x2a4] ss:$16 sps:$4 sm:$0xff]   ;;  %v1249_v5 = vld [vmem:[#allocation2 + $0x2ac] ss:$16 sps:$4 sm:$0xff]  }
  0x4a   :  { %886 = vmatprep.subr.bf16.mxu1 %v1198_v6  ;;  %v1244_v6 = vld [vmem:[#allocation2 + $0x2a0] ss:$16 sps:$4 sm:$0xff]  }
  0x4c   :  { %801 = vmatpush1.bf16.msra.mxu0 %v1200_v7  ;;  %v1247_v7 = vld [vmem:[#allocation2 + $0x2a8] ss:$16 sps:$4 sm:$0xff]  }
  0x4d   :  { %887 = vmatpush1.bf16.msra.mxu1 %v1201_v8  ;;  %802 = vmatprep.subr.bf16.mxu0 %v1202_v9  ;;  %v1252_v8 = vld [vmem:[#allocation2 + $0x2c4] ss:$16 sps:$4 sm:$0xff]   ;;  %v1255_v9 = vld [vmem:[#allocation2 + $0x2cc] ss:$16 sps:$4 sm:$0xff]  }
  0x4e   :  { %888 = vmatprep.subr.bf16.mxu1 %v1204_v10  ;;  %v1250_v10 = vld [vmem:[#allocation2 + $0x2c0] ss:$16 sps:$4 sm:$0xff]  }
  0x50   :  { %803 = vmatpush1.bf16.msra.mxu0 %v1206_v11  ;;  %v1253_v11 = vld [vmem:[#allocation2 + $0x2c8] ss:$16 sps:$4 sm:$0xff]  }
  0x51   :  { %889 = vmatpush1.bf16.msra.mxu1 %v1207_v12  ;;  %804 = vmatprep.subr.bf16.mxu0 %v1208_v13  ;;  %v1258_v12 = vld [vmem:[#allocation2 + $0x2e4] ss:$16 sps:$4 sm:$0xff]   ;;  %v1261_v13 = vld [vmem:[#allocation2 + $0x2ec] ss:$16 sps:$4 sm:$0xff]  }
  0x52   :  { %890 = vmatprep.subr.bf16.mxu1 %v1210_v14  ;;  %v1256_v14 = vld [vmem:[#allocation2 + $0x2e0] ss:$16 sps:$4 sm:$0xff]  }
  0x54   :  { %805 = vmatpush1.bf16.msra.mxu0 %v1212_v15  ;;  %v1259_v15 = vld [vmem:[#allocation2 + $0x2e8] ss:$16 sps:$4 sm:$0xff]  }
  0x55   :  { %891 = vmatpush1.bf16.msra.mxu1 %v1213_v16  ;;  %817 = vmatprep.subr.bf16.mxu0 %v1216_v17 }
  0x56   :  { %903 = vmatprep.subr.bf16.mxu1 %v1219_v18 }
  0x9a   :  { %v1383_v19 = vpop.permute.xlu1 %58  ;;  %v1387_v21 = vpop.permute.xlu0 %40 }
  0x9b   :  { %vm63_vm0 = vcmp.eq.s32.totalorder %v1354_v3, %v1383_v19  ;;  %vm45_vm1 = vcmp.eq.s32.totalorder %v1354_v3, %v1387_v21  ;;  %vm64_vm2 = vcmp.eq.s32.totalorder %v1394_v24, %v1383_v19  ;;  %vm46_vm3 = vcmp.eq.s32.totalorder %v1394_v24, %v1387_v21 }
  0x9c   :  { %vm1412_vm6 = vmor %vm45_vm1, %vm63_vm0 }
  0x9d   :  { %vm70_vm9 = vmor %vm46_vm3, %vm64_vm2 }
  0x9e   :  { %v1385_v20 = vpop.permute.xlu1 %61  ;;  %v1391_v23 = vpop.permute.xlu0 %43 }
  0x9f   :  { %vm66_vm4 = vcmp.eq.s32.totalorder %v1354_v3, %v1385_v20  ;;  %vm48_vm5 = vcmp.eq.s32.totalorder %v1354_v3, %v1391_v23  ;;  %vm67_vm7 = vcmp.eq.s32.totalorder %v1394_v24, %v1385_v20  ;;  %vm49_vm8 = vcmp.eq.s32.totalorder %v1394_v24, %v1391_v23 }
  0xa0   :  { %vm72_vm11 = vmor %vm48_vm5, %vm66_vm4 }
  0xa1   :  { %vm73_vm13 = vmor %vm49_vm8, %vm67_vm7 }
  0xa3   :  { %v1389_v22 = vpop.permute.xlu1 %79  ;;  %v1406_v26 = vpop.permute.xlu0 %76 }
  0xa4   :  { %vm84_vm10 = vcmp.eq.s32.totalorder %v1354_v3, %v1389_v22  ;;  %vm85_vm12 = vcmp.eq.s32.totalorder %v1394_v24, %v1389_v22  ;;  %vm81_vm14 = vcmp.eq.s32.totalorder %v1354_v3, %v1406_v26  ;;  %vm82_vm0 = vcmp.eq.s32.totalorder %v1394_v24, %v1406_v26 }
  0xa5   :  { %vm1428_vm15 = vmor %vm72_vm11, %vm84_vm10 }
  0xa6   :  { %vm1438_vm1 = vmor %vm73_vm13, %vm85_vm12 }
  0xa7   :  { %vm87_vm3 = vmor %vm1412_vm6, %vm81_vm14 }
  0xa8   :  { %v1396_v25 = vpop.permute.xlu1 %94  ;;  %v1434_v30 = vpop.permute.xlu0 %97  ;;  %vm88_vm5 = vmor %vm70_vm9, %vm82_vm0 }
  0xa9   :  { %vm99_vm2 = vcmp.eq.s32.totalorder %v1354_v3, %v1396_v25  ;;  %vm100_vm4 = vcmp.eq.s32.totalorder %v1394_v24, %v1396_v25  ;;  %vm102_vm7 = vcmp.eq.s32.totalorder %v1354_v3, %v1434_v30  ;;  %vm103_vm6 = vcmp.eq.s32.totalorder %v1394_v24, %v1434_v30 }
  0xaa   :  { %vm105_vm8 = vmor %vm87_vm3, %vm99_vm2 }
  0xab   :  { %vm106_vm11 = vmor %vm88_vm5, %vm100_vm4 }
  0xac   :  { %vm108_vm9 = vmor %vm1428_vm15, %vm102_vm7 }
  0xad   :  { %v1420_v28 = vpop.permute.xlu1 %112  ;;  %v1452_v33 = vpop.permute.xlu0 %130  ;;  %vm109_vm3 = vmor %vm1438_vm1, %vm103_vm6 }
  0xae   :  { %vm117_vm10 = vcmp.eq.s32.totalorder %v1354_v3, %v1420_v28  ;;  %vm118_vm12 = vcmp.eq.s32.totalorder %v1394_v24, %v1420_v28  ;;  %vm135_vm14 = vcmp.eq.s32.totalorder %v1354_v3, %v1452_v33  ;;  %vm136_vm2 = vcmp.eq.s32.totalorder %v1394_v24, %v1452_v33 }
  0xaf   :  { %vm123_vm13 = vmor %vm105_vm8, %vm117_vm10 }
  0xb0   :  { %vm124_vm0 = vmor %vm106_vm11, %vm118_vm12 }
  0xb1   :  { %v1436_v31 = vpop.permute.xlu1 %115  ;;  %vm1470_vm5 = vmor %vm123_vm13, %vm135_vm14 }
  0xb2   :  { %vm120_vm4 = vcmp.eq.s32.totalorder %v1354_v3, %v1436_v31  ;;  %v1476_v36 = vpop.permute.xlu0 %151  ;;  %vm1480_vm7 = vmor %vm124_vm0, %vm136_vm2  ;;  %vm121_vm1 = vcmp.eq.s32.totalorder %v1394_v24, %v1436_v31 }
  0xb3   :  { %vm126_vm8 = vmor %vm108_vm9, %vm120_vm4  ;;  %vm156_vm12 = vcmp.eq.s32.totalorder %v1354_v3, %v1476_v36 }
  0xb4   :  { %vm127_vm6 = vmor %vm109_vm3, %vm121_vm1  ;;  %vm157_vm1 = vcmp.eq.s32.totalorder %v1394_v24, %v1476_v36 }
  0xb6   :  { %v1456_v34 = vpop.permute.xlu1 %133 }
  0xb7   :  { %vm138_vm15 = vcmp.eq.s32.totalorder %v1354_v3, %v1456_v34  ;;  %vm139_vm10 = vcmp.eq.s32.totalorder %v1394_v24, %v1456_v34 }
  0xb8   :  { %vm144_vm11 = vmor %vm126_vm8, %vm138_vm15 }
  0xb9   :  { %vm1492_vm14 = vmor %vm127_vm6, %vm139_vm10 }
  0xba   :  { %vm162_vm9 = vmor %vm144_vm11, %vm156_vm12 }
  0xbb   :  { %v1478_v37 = vpop.permute.xlu1 %148  ;;  %vm163_vm6 = vmor %vm1492_vm14, %vm157_vm1  ;;  %vm47_vm14 = vcmp.eq.s32.totalorder %v1523_v55, %v1387_v21 }
  0xbc   :  { %vm153_vm13 = vcmp.eq.s32.totalorder %v1354_v3, %v1478_v37  ;;  %vm154_vm0 = vcmp.eq.s32.totalorder %v1394_v24, %v1478_v37 }
  0xbd   :  { %vm159_vm4 = vmor %vm1470_vm5, %vm153_vm13  ;;  %vm38_vm13 = vcmp.eq.s32.totalorder %v1523_v55, 320 }
  0xbe   :  { %vm160_vm15 = vmor %vm1480_vm7, %vm154_vm0  ;;  %vm50_vm0 = vcmp.eq.s32.totalorder %v1523_v55, %v1391_v23 }
  0xc0   :  { %v1498_v40 = vpop.permute.xlu1 %166 }
  0xc1   :  { %vm171_vm2 = vcmp.eq.s32.totalorder %v1354_v3, %v1498_v40  ;;  %vm172_vm3 = vcmp.eq.s32.totalorder %v1394_v24, %v1498_v40 }
  0xc2   :  { %vm177_vm8 = vmor %vm159_vm4, %vm171_vm2  ;;  %vm68_vm4 = vcmp.eq.s32.totalorder %v1523_v55, %v1385_v20 }
  0xc3   :  { %vm178_vm12 = vmor %vm160_vm15, %vm172_vm3  ;;  %v979_v44 = vsel %vm177_vm8, 1.0, %v1321_v42  ;;  %vm86_vm15 = vcmp.eq.s32.totalorder %v1523_v55, %v1389_v22  ;;  %vm83_vm8 = vcmp.eq.s32.totalorder %v1523_v55, %v1406_v26 }
  0xc4   :  { %v1510_v41 = vpop.permute.xlu1 %169  ;;  %v980_v45 = vsel %vm178_vm12, 1.0, %v1321_v42  ;;  %vm53_vm2 = vmor %vm38_vm13, %vm47_vm14  ;;  %vm122_vm14 = vcmp.eq.s32.totalorder %v1523_v55, %v1436_v31 }
  0xc5   :  { %vm174_vm10 = vcmp.eq.s32.totalorder %v1354_v3, %v1510_v41  ;;  %vm175_vm11 = vcmp.eq.s32.totalorder %v1394_v24, %v1510_v41  ;;  %v1234_v3 = vld [vmem:[#allocation2 + $0x264] ss:$16 sps:$4 sm:$0xff]   ;;  %vm56_vm3 = vmor %vm38_vm13, %vm50_vm0 }
  0xc6   :  { %vm180_vm5 = vmor %vm162_vm9, %vm174_vm10  ;;  %vm65_vm9 = vcmp.eq.s32.totalorder %v1523_v55, %v1383_v19 }
  0xc7   :  { %v982_v43 = vsel %vm180_vm5, 1.0, %v1321_v42  ;;  %vm181_vm7 = vmor %vm163_vm6, %vm175_vm11  ;;  %vm101_vm11 = vcmp.eq.s32.totalorder %v1523_v55, %v1396_v25  ;;  %vm104_vm5 = vcmp.eq.s32.totalorder %v1523_v55, %v1434_v30 }
  0xc8   :  { %v983_v46 = vsel %vm181_vm7, 1.0, %v1321_v42  ;;  %v195_v47 = vpack.c.bf16 %v982_v43, %v979_v44  ;;  %vm71_vm1 = vmor %vm53_vm2, %vm65_vm9  ;;  %vm119_vm7 = vcmp.eq.s32.totalorder %v1523_v55, %v1420_v28  ;;  %vm140_vm9 = vcmp.eq.s32.totalorder %v1523_v55, %v1456_v34 }
  0xc9   :  { %v196_v48 = vpack.c.bf16 %v983_v46, %v980_v45  ;;  %vm74_vm10 = vmor %vm56_vm3, %vm68_vm4  ;;  %vm137_vm4 = vcmp.eq.s32.totalorder %v1523_v55, %v1452_v33 }
  0xca   :  { %vm92_vm12 = vmor %vm74_vm10, %vm86_vm15 }
  0xcb   :  { %806 = vmatprep.mubr.bf16.mxu0 %v196_v48  ;;  %892 = vmatprep.mubr.bf16.mxu1 %v196_v48  ;;  %vm89_vm6 = vmor %vm71_vm1, %vm83_vm8  ;;  %vm158_vm1 = vcmp.eq.s32.totalorder %v1523_v55, %v1476_v36  ;;  %vm176_vm8 = vcmp.eq.s32.totalorder %v1523_v55, %v1510_v41 }
  0xcc   :  { %807 = vmatmul.mubr.bf16.vlgmr.msra.gmra.mrb[0].mxu0 %v195_v47  ;;  %893 = vmatmul.mubr.bf16.vlgmr.msra.gmra.mrb[0].mxu1 %v195_v47  ;;  %vm107_vm13 = vmor %vm89_vm6, %vm101_vm11  ;;  %vm155_vm11 = vcmp.eq.s32.totalorder %v1523_v55, %v1478_v37 }
  0xcd   :  { %818 = vmatpush1.bf16.msra.mxu0 %v1214_v49  ;;  %904 = vmatpush1.bf16.msra.mxu1 %v1217_v50  ;;  %vm110_vm0 = vmor %vm92_vm12, %vm104_vm5  ;;  %vm173_vm5 = vcmp.eq.s32.totalorder %v1523_v55, %v1498_v40 }
  0xce   :  { %819 = vmatprep.subr.bf16.mxu0 %v1222_v51  ;;  %905 = vmatprep.subr.bf16.mxu1 %v1225_v52  ;;  %vm125_vm2 = vmor %vm107_vm13, %vm119_vm7 }
  0xcf   :  { %849 = vmatprep.mubr.bf16.mxu0 %v1314_v2  ;;  %935 = vmatprep.mubr.bf16.mxu1 %v1314_v2  ;;  %v1232_v2 = vld [vmem:[#allocation2 + $0x260] ss:$16 sps:$4 sm:$0xff]   ;;  %vm128_vm3 = vmor %vm110_vm0, %vm122_vm14 }
  0xd0   :  { %vm146_vm15 = vmor %vm128_vm3, %vm140_vm9 }
  0xd1   :  { %820 = vmatpush1.bf16.msra.mxu0 %v1220_v53  ;;  %906 = vmatpush1.bf16.msra.mxu1 %v1223_v54  ;;  %vm143_vm10 = vmor %vm125_vm2, %vm137_vm4 }
  0xd2   :  { %821 = vmatprep.subr.bf16.mxu0 %v1228_v56  ;;  %907 = vmatprep.subr.bf16.mxu1 %v1231_v57  ;;  %vm164_vm12 = vmor %vm146_vm15, %vm158_vm1 }
  0xd3   :  { %vm182_vm6 = vmor %vm164_vm12, %vm176_vm8 }
  0xd4   :  { %vm161_vm7 = vmor %vm143_vm10, %vm155_vm11  ;;  %v984_v16 = vsel %vm182_vm6, 1.0, %v1321_v42 }
  0xd5   :  { %822 = vmatpush1.bf16.msra.mxu0 %v1226_v58  ;;  %908 = vmatpush1.bf16.msra.mxu1 %v1229_v59  ;;  %vm179_vm13 = vmor %vm161_vm7, %vm173_vm5 }
  0xd6   :  { %823 = vmatprep.subr.bf16.mxu0 %v1234_v3  ;;  %909 = vmatprep.subr.bf16.mxu1 %v1237_v60  ;;  %v981_v17 = vsel %vm179_vm13, 1.0, %v1321_v42 }
  0xd7   :  { %v197_v18 = vpack.c.bf16 %v984_v16, %v981_v17 }
  0xd9   :  { %824 = vmatpush1.bf16.msra.mxu0 %v1232_v2  ;;  %910 = vmatpush1.bf16.msra.mxu1 %v1235_v61 }
  0xda   :  { %825 = vmatprep.subr.bf16.mxu0 %v1240_v62  ;;  %911 = vmatprep.subr.bf16.mxu1 %v1243_v63 }
  0xdd   :  { %826 = vmatpush1.bf16.msra.mxu0 %v1238_v0  ;;  %912 = vmatpush1.bf16.msra.mxu1 %v1241_v1 }
  0xde   :  { %827 = vmatprep.subr.bf16.mxu0 %v1246_v4  ;;  %913 = vmatprep.subr.bf16.mxu1 %v1249_v5 }
  0xe1   :  { %828 = vmatpush1.bf16.msra.mxu0 %v1244_v6  ;;  %914 = vmatpush1.bf16.msra.mxu1 %v1247_v7 }
  0xe2   :  { %829 = vmatprep.subr.bf16.mxu0 %v1252_v8  ;;  %915 = vmatprep.subr.bf16.mxu1 %v1255_v9 }
  0xe5   :  { %830 = vmatpush1.bf16.msra.mxu0 %v1250_v10  ;;  %916 = vmatpush1.bf16.msra.mxu1 %v1253_v11 }
  0xe6   :  { %831 = vmatprep.subr.bf16.mxu0 %v1258_v12  ;;  %917 = vmatprep.subr.bf16.mxu1 %v1261_v13 }
  0xe9   :  { %832 = vmatpush1.bf16.msra.mxu0 %v1256_v14  ;;  %918 = vmatpush1.bf16.msra.mxu1 %v1259_v15 }
  0xec   :  { %850 = vmatmul.mubr.bf16.vlgmr.msra.gmra.mrb[0].mxu0 %v197_v18  ;;  %936 = vmatmul.mubr.bf16.vlgmr.msra.gmra.mrb[0].mxu1 %v197_v18 }
 0x1bf   :  { %v851_v19 = vpop.f32.mrb[0].mxu0  ;;  %v937_v20 = vpop.f32.mrb[0].mxu1 }
 0x1c0   :  { %v853_v21 = vpop.f32.mrb[1].mxu0  ;;  %v939_v22 = vpop.f32.mrb[1].mxu1 }
 0x1c1   :  { %v946_v23 = vmax.f32 %v851_v19, %v853_v21  ;;  %v855_v24 = vpop.f32.mrb[2].mxu0  ;;  %v941_v25 = vpop.f32.mrb[2].mxu1 }
 0x1c2   :  { %v857_v26 = vpop.f32.mrb[3].mxu0  ;;  %v943_v27 = vpop.f32.mrb[3].mxu1 }
 0x1c3   :  { %v948_v28 = vmax.f32 %v946_v23, %v937_v20  ;;  %v947_v29 = vmax.f32 %v855_v24, %v857_v26 }
 0x1c5   :  { %v950_v30 = vmax.f32 %v948_v28, %v939_v22  ;;  %v949_v31 = vmax.f32 %v947_v29, %v941_v25 }
 0x1c7   :  { %v951_v32 = vmax.f32 %v949_v31, %v943_v27  ;;  %952 = vrot.lane.b32.xlu0 %v950_v30, %s1322_s0 }
 0x1c9   :  { %954 = vrot.lane.b32.xlu1 %v951_v32, %s1322_s0 }
 0x239   :  { %v953_v33 = vpop.permute.xlu0 %952 }
 0x23a   :  { %v956_v34 = vmax.f32 %v950_v30, %v953_v33 }
 0x23b   :  { %v955_v35 = vpop.permute.xlu1 %954 }
 0x23c   :  { %v958_v36 = vmax.f32 %v956_v34, 0.0  ;;  %v957_v37 = vmax.f32 %v951_v32, %v955_v35 }
 0x23e   :  { %960 = vst [vmem:[#allocation5] sm:$0xff] %v958_v36  ;;  %v959_v38 = vmax.f32 %v957_v37, 0.0 }
 0x240   :  { %961 = vst [vmem:[#allocation5 + $0x8] sm:$0xff] %v959_v38 }
 0x241   :  { %1295 = shalt.err (!%p1292_p12)
}
 0x242   :  { %s1296_s3 = scalar_lea.hbm %s1576_s2, 256 }
 0x243   :  { %p1297_p13 = scmp.ne.s32.totalorder %s1576_s2, %s1296_s3  ;;  %p1300_p0 = scmp.lt.u32.totalorder %s1296_s3, %s1576_s2 }
 0x245   :  { %p1302_p1 = pnand %p1300_p0, %p1297_p13 }
 0x247   :  { %1305 = shalt.err (!%p1302_p1)
}
 0x248   :  { %s1324_s8 = smov 128   ;;  %s1325_s9 = smov 8  }
 0x249   :  { %973 = dma.vmem_to_hbm [thread:$0]  %s968_s27, 256, %s1576_s2, [#allocation4], %s1324_s8, %s1324_s8, %s1325_s9  }
 0x24a   :  { %1308 = dma.done.wait [#allocation4], 256  }
 0x24b   :  { %1309 = vsyncadd [#allocation4], 4294967040 }
 0x24c   :  { %977 = vsyncpa [#allocation3], 1 }
 0x24d   :  { %978 = vsyncpa [#allocation4], 1 }

</bundles_post_ra>
